<compile_context>
chip_gen: v7x
topology: tpu7x:2x2x1
jax: 0.10.0
libtpu: 0.0.40
codegen_flags: <defaults>
</compile_context>

<pallas_src>
import math

import jax
import jax.numpy as jnp
from jax import lax
from jax.experimental import pallas as pl
from jax.experimental.pallas import tpu as pltpu


def _linear_kernel(x_ref, w_ref, b_ref, o_ref):
    # x_ref: (TM, K) f32
    # w_ref: (N, K)  f32   (native PyTorch layout, lane-dense along K)
    # b_ref: (1, N)  f32
    # o_ref: (TM, N) f32
    # y = x @ W^T + b  -> contract last dim of x with last dim of w on the MXU.
    # precision=HIGHEST keeps true-f32 multi-pass so results match torch f32
    # closely even for large K (review correctness concern).
    y = lax.dot_general(
        x_ref[...],
        w_ref[...],
        dimension_numbers=(((1,), (1,)), ((), ())),
        preferred_element_type=jnp.float32,
        precision=lax.Precision.HIGHEST,
    )
    o_ref[...] = y + b_ref[...]


def _round_up(x, m):
    return -(-x // m) * m


def _choose_tiling(B, K):
    """Pick (TM, grid_m, n_buf) for the batch-tiled grid.

    - Target a 1024-row batch tile so the ~0.35 us per-grid-step overhead is
      amortised against the x-tile DMA (x-read HBM-bound regime).
    - Keep all x input buffers under a VMEM budget that is safe even on v7x
      (64 MiB physical) and, via vmem_limit_bytes, on v5e (16 MiB scoped
      default). This also guards large in_channels (K untiled).
    - For large B, keep >= 2 balanced grid steps so the "parallel" batch axis
      can split across v7x's two TensorCores.
    """
    bytes_per_row = 4 * K
    x_budget = 36 << 20          # budget for all x input buffers together
    desired = 1024               # DMA-efficient batch tile

    if B <= desired and 2 * B * bytes_per_row <= x_budget:
        # Single full-batch tile (the benchmark shape lands here).
        return B, 1, 2

    n_buf = 3                    # deeper input buffering for the x stream
    max_tm_by_vmem = max(8, (x_budget // (n_buf * bytes_per_row)) // 8 * 8)
    tm = min(desired, max_tm_by_vmem)
    # v7x megacore: at least 2 grid steps, balanced halves, multiple of 8.
    tm = min(tm, max(8, _round_up(-(-B // 2), 8)))
    grid_m = pl.cdiv(B, tm)
    return tm, grid_m, n_buf


def linear_forward(xb, weight, bias, *, tile_m=None):
    """Forward of Flatten + nn.Linear: y = flatten(xb) @ W^T + b.

    xb: (B, ...) f32; weight: (num_classes, in_channels); bias: (num_classes,).
    tile_m: optional batch-tile override (used to test partial-tile handling).
    """
    B = xb.shape[0]
    K = math.prod(xb.shape[1:])
    N = weight.shape[0]
    assert weight.shape == (N, K), (weight.shape, (N, K))

    # Glue: flatten exactly like nn.Flatten(start_dim=1).
    x2d = xb.reshape(B, K).astype(jnp.float32)
    w2d = weight.astype(jnp.float32)                   # (N, K), lane-dense in K
    b2d = bias.reshape(1, N).astype(jnp.float32)

    if tile_m is not None:
        TM = B if tile_m >= B else max(8, (tile_m // 8) * 8)
        grid_m = pl.cdiv(B, TM)
        n_buf = 3 if grid_m >= 3 else 2
    else:
        TM, grid_m, n_buf = _choose_tiling(B, K)

    # Approximate VMEM need: x buffers + double-buffered weight + lane-padded
    # output buffers + bias/internal scratch headroom.
    vmem_need = (n_buf * TM * K * 4
                 + 2 * N * K * 4
                 + 2 * TM * max(N, 128) * 4
                 + (1 << 20))
    vmem_limit = None
    if vmem_need > (12 << 20):
        # Raise v5e's 16 MiB scoped default; stay well under v7x's 64 MiB
        # physical VMEM.
        vmem_limit = int(min(max(vmem_need + (8 << 20), 32 << 20), 48 << 20))

    x_index = lambda i: (i, 0)
    if n_buf > 2 and grid_m >= 2:
        try:
            x_spec = pl.BlockSpec((TM, K), x_index,
                                  pipeline_mode=pl.Buffered(n_buf))
        except TypeError:
            # Fallback for jax versions without pipeline_mode on BlockSpec.
            x_spec = pl.BlockSpec((TM, K), x_index)
    else:
        x_spec = pl.BlockSpec((TM, K), x_index)

    out = pl.pallas_call(
        _linear_kernel,
        out_shape=jax.ShapeDtypeStruct((B, N), jnp.float32),
        grid_spec=pltpu.PrefetchScalarGridSpec(
            num_scalar_prefetch=0,
            grid=(grid_m,),
            in_specs=[
                # x: one batch tile per grid step (multi-buffered).
                x_spec,
                # weight: whole array, lane-dense along K, resident every step.
                pl.BlockSpec((N, K), lambda i: (0, 0)),
                # bias: whole array.
                pl.BlockSpec((1, N), lambda i: (0, 0)),
            ],
            out_specs=pl.BlockSpec((TM, N), lambda i: (i, 0)),
        ),
        compiler_params=pltpu.CompilerParams(
            # Batch tiles are independent -> megacore-shardable on v7x.
            dimension_semantics=("parallel",),
            vmem_limit_bytes=vmem_limit,
        ),
    )(x2d, w2d, b2d)
    return out


if __name__ == "__main__":
    # Module defaults: in_channels=1024, num_classes=2.
    # Input (2, 4, 16, 16): 4*16*16 = 1024 = in_channels.
    B, C, H, W = 2, 4, 16, 16
    in_channels = C * H * W
    num_classes = 2

    key = jax.random.PRNGKey(0)
    kx, kw, kb, kx2 = jax.random.split(key, 4)

    xb = jax.random.normal(kx, (B, C, H, W), dtype=jnp.float32)

    # Deterministic parameter init mimicking nn.Linear default:
    # uniform(-1/sqrt(in_channels), 1/sqrt(in_channels)).
    bound = 1.0 / (in_channels ** 0.5)
    weight = jax.random.uniform(
        kw, (num_classes, in_channels), minval=-bound, maxval=bound,
        dtype=jnp.float32)
    bias = jax.random.uniform(
        kb, (num_classes,), minval=-bound, maxval=bound, dtype=jnp.float32)

    # --- Test 1: benchmark shape (single full-batch tile) ---
    out = linear_forward(xb, weight, bias)
    out = jax.block_until_ready(out)
    ref = (jnp.dot(xb.reshape(B, in_channels), weight.T,
                   precision=lax.Precision.HIGHEST) + bias)
    assert out.shape == (B, num_classes)
    assert jnp.allclose(out, ref, atol=1e-4, rtol=1e-4)

    # --- Test 2: multi-step grid with partial last tile (B % TM != 0),
    #             exercising the Buffered(3) input path. ---
    B2 = 42
    xb2 = jax.random.normal(kx2, (B2, in_channels), dtype=jnp.float32)
    out2 = linear_forward(xb2, weight, bias, tile_m=8)   # grid_m=6, last tile=2
    out2 = jax.block_until_ready(out2)
    ref2 = (jnp.dot(xb2, weight.T, precision=lax.Precision.HIGHEST) + bias)
    assert out2.shape == (B2, num_classes)
    assert jnp.allclose(out2, ref2, atol=1e-4, rtol=1e-4)

    print("KERNEL_OK")
</pallas_src>

<mosaic_0001>
module attributes {stable_mosaic.version = 11 : i64} {
  func.func @_linear_kernel(%arg0: i32, %arg1: memref<2x1024xf32, #tpu.memory_space<vmem>>, %arg2: memref<2x1024xf32, #tpu.memory_space<vmem>>, %arg3: memref<1x2xf32, #tpu.memory_space<vmem>>, %arg4: memref<2x2xf32, #tpu.memory_space<vmem>>) attributes {dimension_semantics = [#tpu.dimension_semantics<parallel>], iteration_bounds = array<i64: 1>, scalar_prefetch = 0 : i64, scratch_operands = 0 : i64, tpu.core_type = #tpu.core_type<tc>, window_params = [{transform_indices = @transform_0, window_bounds = array<i64: 2, 1024>}, {pipeline_mode = #tpu.pipeline_mode<synchronous>, transform_indices = @transform_1, window_bounds = array<i64: 2, 1024>}, {pipeline_mode = #tpu.pipeline_mode<synchronous>, transform_indices = @transform_2, window_bounds = array<i64: 1, 2>}, {transform_indices = @transform_3, window_bounds = array<i64: 2, 2>}]} {
    %c0 = arith.constant 0 : index
    %c0_0 = arith.constant 0 : index
    %0 = vector.load %arg1[%c0, %c0_0] : memref<2x1024xf32, #tpu.memory_space<vmem>>, vector<2x1024xf32>
    %c0_1 = arith.constant 0 : index
    %c0_2 = arith.constant 0 : index
    %1 = vector.load %arg2[%c0_1, %c0_2] : memref<2x1024xf32, #tpu.memory_space<vmem>>, vector<2x1024xf32>
    %cst = arith.constant dense<0.000000e+00> : vector<2x2xf32>
    %2 = tpu.matmul %0, %1, %cst {dimension_numbers = #tpu.dot_dimension_numbers<[1], [1], [0], [0], [0, 0, 1, 0], [], []>, precision = #tpu.contract_precision<fp32>} : vector<2x1024xf32>, vector<2x1024xf32>, vector<2x2xf32> -> vector<2x2xf32>
    %c0_3 = arith.constant 0 : index
    %c0_4 = arith.constant 0 : index
    %3 = vector.load %arg3[%c0_3, %c0_4] : memref<1x2xf32, #tpu.memory_space<vmem>>, vector<1x2xf32>
    %4 = vector.broadcast %3 : vector<1x2xf32> to vector<2x2xf32>
    %5 = arith.addf %2, %4 : vector<2x2xf32>
    %c0_5 = arith.constant 0 : index
    %c0_6 = arith.constant 0 : index
    %6 = vector.load %arg4[%c0_5, %c0_6] : memref<2x2xf32, #tpu.memory_space<vmem>>, vector<2x2xf32>
    tpu.vector_store %arg4[%c0_5, %c0_6], %5 {strides = array<i32>} : memref<2x2xf32, #tpu.memory_space<vmem>>, vector<2x2xf32>,
    return
  }
  func.func @transform_0(%arg0: i32) -> (i32, i32) {
    %c0_i32 = arith.constant 0 : i32
    %c0_i32_0 = arith.constant 0 : i32
    return %arg0, %c0_i32 : i32, i32
  }
  func.func @transform_1(%arg0: i32) -> (i32, i32) {
    %c0_i32 = arith.constant 0 : i32
    %c0_i32_0 = arith.constant 0 : i32
    %c0_i32_1 = arith.constant 0 : i32
    return %c0_i32, %c0_i32_0 : i32, i32
  }
  func.func @transform_2(%arg0: i32) -> (i32, i32) {
    %c0_i32 = arith.constant 0 : i32
    %c0_i32_0 = arith.constant 0 : i32
    %c0_i32_1 = arith.constant 0 : i32
    return %c0_i32, %c0_i32_0 : i32, i32
  }
  func.func @transform_3(%arg0: i32) -> (i32, i32) {
    %c0_i32 = arith.constant 0 : i32
    %c0_i32_0 = arith.constant 0 : i32
    return %arg0, %c0_i32 : i32, i32
  }
}

</mosaic_0001>

<bundles_post_ra>
// kernel: tpu_custom_call.1
= control target key start
LH: loop header
LB: loop body
LE: loop exit
PB: predicated region body
PF: predicated region fallthrough
CT: control target
= control target key end

     0   :  { %8 = vsyncpa [#allocation3], 0  ;;  %s2442_s0 = inlined_call_operand.hbm [shape: f32[2,1024], index: 0, kind: input, shape index: {}]   ;;  %s2443_s1 = inlined_call_operand.hbm [shape: f32[2,1024], index: 1, kind: input, shape index: {}]   ;;  %s2444_s2 = inlined_call_operand.vmem [shape: f32[1,2], index: 2, kind: input, shape index: {}]   ;;  %s2445_s3 = inlined_call_operand.hbm [shape: f32[2,2], index: 3, kind: output, shape index: {}]  }
   0x1   :  { %9 = vsyncpa [#allocation6], 0 }
   0x2   :  { %10 = vsyncpa [#allocation4], 0  ;;  %s2171_s12 = smov [#allocation2]   ;;  %s2172_s14 = smov [#allocation5]  }
   0x3   :  { %s17_s13 = sshll.u32 %s2171_s12, 4  ;;  %s27_s15 = sshll.u32 %s2172_s14, 4  ;;  %s18_s13 = int_to_ptr.vmem [resolvable:$true] %s17_s13  ;;  %s28_s15 = int_to_ptr.vmem [resolvable:$true] %s27_s15 }
   0x4   :  { %s2099_s18 = scalar_lea.hbm %s2442_s0, 256 }
   0x5   :  { %p2100_p0 = scmp.ne.s32.totalorder %s2442_s0, %s2099_s18  ;;  %p2103_p1 = scmp.lt.u32.totalorder %s2099_s18, %s2442_s0 }
   0x7   :  { %p2105_p2 = pnand %p2103_p1, %p2100_p0 }
   0x9   :  { %2108 = shalt.err (!%p2105_p2)
}
   0xa   :  { %s2109_s23 = scalar_lea.vmem %s18_s13, 256  ;;  %p2114_p4 = scmp.lt.s32.totalorder %s18_s13, %s18_s13 }
   0xb   :  { %p2110_p3 = scmp.ne.s32.totalorder %s18_s13, %s2109_s23  ;;  %p2115_p5 = scmp.lt.s32.totalorder %s2109_s23, %s2109_s23 }
   0xd   :  { %p2116_p6 = por %p2115_p5, %p2114_p4 }
   0xf   :  { %p2117_p7 = pnand %p2116_p6, %p2110_p3 }
  0x11   :  { %2120 = shalt.err (!%p2117_p7)
}
  0x12   :  { %20 = dma.hbm_to_vmem [thread:$0]  %s2442_s0, 256, %s18_s13, [#allocation3]  }
  0x13   :  { %s2121_s28 = scalar_lea.hbm %s2443_s1, 256 }
  0x14   :  { %p2122_p8 = scmp.ne.s32.totalorder %s2443_s1, %s2121_s28  ;;  %p2125_p9 = scmp.lt.u32.totalorder %s2121_s28, %s2443_s1 }
  0x16   :  { %p2127_p10 = pnand %p2125_p9, %p2122_p8 }
  0x18   :  { %2130 = shalt.err (!%p2127_p10)
}
  0x19   :  { %s2131_s6 = scalar_lea.vmem %s28_s15, 256  ;;  %p2136_p12 = scmp.lt.s32.totalorder %s28_s15, %s28_s15 }
  0x1a   :  { %p2132_p11 = scmp.ne.s32.totalorder %s28_s15, %s2131_s6  ;;  %p2137_p13 = scmp.lt.s32.totalorder %s2131_s6, %s2131_s6 }
  0x1c   :  { %p2138_p0 = por %p2137_p13, %p2136_p12 }
  0x1e   :  { %p2139_p1 = pnand %p2138_p0, %p2132_p11 }
  0x20   :  { %2142 = shalt.err (!%p2139_p1)
}
  0x21   :  { %30 = dma.hbm_to_vmem [thread:$0]  %s2443_s1, 256, %s28_s15, [#allocation6]  }
  0x22   :  { %2165 = dma.done.wait [#allocation3], 256  }
  0x23   :  { %2166 = vsyncadd [#allocation3], 4294967040 }
  0x24   :  { %2167 = dma.done.wait [#allocation6], 256  }
  0x25   :  { %2168 = vsyncadd [#allocation6], 4294967040  ;;  %v56_v0 = vlaneseq  ;;  %v2173_v1 = vmov 1983009808   ;;  %v2221_v6 = vld [vmem:[#allocation5] sm:$0xff]  ;;  %v2223_v7 = vld [vmem:[#allocation5 + $0x8] sm:$0xff] }
  0x26   :  { %v54_v2 = vunpack.c.l.s4 %v2173_v1  ;;  %v2225_v8 = vld [vmem:[#allocation2] sm:$0xff]  ;;  %v2233_v12 = vld [vmem:[#allocation2 + $0x8] sm:$0xff]  ;;  %v96_v59 = vcombine.high %v2221_v6, %v2221_v6  ;;  %v113_v61 = vcombine.high %v2223_v7, %v2223_v7  ;;  %s2174_s9 = smov [#allocation7]   ;;  %vm2026_vm0 = vcmask 9216  }
  0x27   :  { %v57_v3 = vshrl.u32 %v56_v0, 7  ;;  %v52_v58 = vcombine.high %v2225_v8, %v2225_v8  ;;  %v69_v60 = vcombine.high %v2233_v12, %v2233_v12  ;;  %s2034_s10 = sshll.u32 %s2174_s9, 4  ;;  %s2035_s10 = int_to_ptr.vmem [resolvable:$true] %s2034_s10 }
  0x28   :  { %v55_v4 = vunpack.c.0.s8 %v54_v2  ;;  %s2143_s11 = scalar_lea.vmem %s2035_s10, 32  ;;  %p2148_p3 = scmp.lt.s32.totalorder %s2035_s10, %s2035_s10 }
  0x29   :  { %p2144_p2 = scmp.ne.s32.totalorder %s2035_s10, %s2143_s11  ;;  %p2149_p4 = scmp.lt.s32.totalorder %s2143_s11, %s2143_s11 }
  0x2a   :  { %v2219_v5 = vsub.s32 %v55_v4, %v57_v3 }
  0x2b   :  { %p2150_p5 = por %p2149_p4, %p2148_p3 }
  0x2c   :  { %v103_v9 = vrot.slane %v2221_v6, %v2219_v5  ;;  %v120_v10 = vrot.slane %v2223_v7, %v2219_v5  ;;  %v59_v11 = vrot.slane %v2225_v8, %v2219_v5  ;;  %v76_v13 = vrot.slane %v2233_v12, %v2219_v5 }
  0x2d   :  { %v110_v62 = vrot.slane %v96_v59, %v2219_v5  ;;  %v66_v63 = vrot.slane %v52_v58, %v2219_v5  ;;  %v127_v0 = vrot.slane %v113_v61, %v2219_v5  ;;  %v83_v1 = vrot.slane %v69_v60, %v2219_v5  ;;  %p2151_p6 = pnand %p2150_p5, %p2144_p2 }
  0x2e   :  { %v111_v14 = vcombine.high %v103_v9, %v103_v9  ;;  %v2237_v15 = vand.u32 4294901760, %v103_v9  ;;  %v128_v16 = vcombine.high %v120_v10, %v120_v10  ;;  %v2239_v17 = vand.u32 4294901760, %v120_v10 }
  0x2f   :  { %v67_v18 = vcombine.high %v59_v11, %v59_v11  ;;  %v2241_v19 = vand.u32 4294901760, %v59_v11  ;;  %v84_v20 = vcombine.high %v76_v13, %v76_v13  ;;  %v2243_v21 = vand.u32 4294901760, %v76_v13 }
  0x30   :  { %v2245_v22 = vand.u32 4294901760, %v111_v14  ;;  %v2247_v23 = vand.u32 4294901760, %v128_v16  ;;  %v2250_v24 = vsub.f32 %v103_v9, %v2237_v15  ;;  %v2253_v25 = vsub.f32 %v120_v10, %v2239_v17 }
  0x31   :  { %v2255_v26 = vand.u32 4294901760, %v67_v18  ;;  %v2257_v27 = vand.u32 4294901760, %v84_v20  ;;  %v2260_v28 = vsub.f32 %v59_v11, %v2241_v19  ;;  %v2263_v29 = vsub.f32 %v76_v13, %v2243_v21 }
  0x32   :  { %139 = vmatprep.subr.mxu1 %v2245_v22  ;;  %1083 = vmatprep.subr.mxu0 %v2247_v23  ;;  %v2268_v30 = vsub.f32 %v111_v14, %v2245_v22  ;;  %v228_v31 = vand.u32 4294901760, %v2250_v24  ;;  %v2272_v32 = vsub.f32 %v128_v16, %v2247_v23  ;;  %v1172_v33 = vand.u32 4294901760, %v2253_v25 }
  0x33   :  { %141 = vmatpush1.xpose.msra.mxu1 %v2237_v15  ;;  %1085 = vmatpush1.xpose.msra.mxu0 %v2239_v17  ;;  %v205_v34 = vsub.f32 %v67_v18, %v2255_v26  ;;  %v1149_v35 = vsub.f32 %v84_v20, %v2257_v27  ;;  %v212_v36 = vand.u32 4294901760, %v2260_v28  ;;  %v1156_v37 = vand.u32 4294901760, %v2263_v29 }
  0x34   :  { %v222_v38 = vand.u32 4294901760, %v2268_v30  ;;  %v229_v39 = vsub.f32 %v2250_v24, %v228_v31  ;;  %v1166_v40 = vand.u32 4294901760, %v2272_v32  ;;  %v1173_v41 = vsub.f32 %v2253_v25, %v1172_v33 }
  0x35   :  { %v206_v42 = vand.u32 4294901760, %v205_v34  ;;  %v1150_v43 = vand.u32 4294901760, %v1149_v35  ;;  %v213_v44 = vsub.f32 %v2260_v28, %v212_v36  ;;  %v1157_v45 = vsub.f32 %v2263_v29, %v1156_v37 }
  0x36   :  { %v223_v46 = vsub.f32 %v2268_v30, %v222_v38  ;;  %v1167_v47 = vsub.f32 %v2272_v32, %v1166_v40  ;;  %v230_v56 = vand.u32 4294901760, %v229_v39  ;;  %v1174_v57 = vand.u32 4294901760, %v1173_v41 }
  0x37   :  { %v207_v48 = vsub.f32 %v205_v34, %v206_v42  ;;  %v1151_v49 = vsub.f32 %v1149_v35, %v1150_v43  ;;  %v214_v51 = vand.u32 4294901760, %v213_v44  ;;  %v1158_v52 = vand.u32 4294901760, %v1157_v45 }
  0x38   :  { %v224_v50 = vand.u32 4294901760, %v223_v46  ;;  %v1168_v53 = vand.u32 4294901760, %v1167_v47  ;;  %v112_v2 = vcombine.high %v110_v62, %v110_v62  ;;  %v68_v3 = vcombine.high %v66_v63, %v66_v63 }
  0x39   :  { %v208_v54 = vand.u32 4294901760, %v207_v48  ;;  %v1152_v55 = vand.u32 4294901760, %v1151_v49  ;;  %v129_v4 = vcombine.high %v127_v0, %v127_v0  ;;  %v85_v6 = vcombine.high %v83_v1, %v83_v1 }
  0x3a   :  { %225 = vmatprep.subr.mxu1 %v224_v50  ;;  %1169 = vmatprep.subr.mxu0 %v1168_v53  ;;  %v2323_v7 = vand.u32 4294901760, %v112_v2  ;;  %v2325_v8 = vand.u32 4294901760, %v68_v3  ;;  %v2355_v14 = vand.u32 4294901760, %v66_v63  ;;  %v2357_v16 = vand.u32 4294901760, %v83_v1 }
  0x3b   :  { %209 = vmatprep.mubr.f32.mxu1 %v208_v54  ;;  %1153 = vmatprep.mubr.f32.mxu0 %v1152_v55  ;;  %v2327_v5 = vand.u32 4294901760, %v129_v4  ;;  %v2329_v9 = vand.u32 4294901760, %v85_v6  ;;  %v2359_v18 = vand.u32 4294901760, %v110_v62  ;;  %v2361_v20 = vand.u32 4294901760, %v127_v0 }
  0x3c   :  { %215 = vmatmul.mubr.f32.vlgmr.msra.gmra.mrb[0].mxu1 %v214_v51  ;;  %1159 = vmatmul.mubr.f32.vlgmr.msra.gmra.mrb[0].mxu0 %v1158_v52  ;;  %v2342_v10 = vsub.f32 %v68_v3, %v2325_v8  ;;  %v2345_v11 = vsub.f32 %v112_v2, %v2323_v7 }
  0x3d   :  { %231 = vmatpush1.xpose.msra.mxu1 %v230_v56  ;;  %1175 = vmatpush1.xpose.msra.mxu0 %v1174_v57  ;;  %v2350_v12 = vsub.f32 %v85_v6, %v2329_v9  ;;  %v2353_v13 = vsub.f32 %v129_v4, %v2327_v5 }
  0x3e   :  { %295 = vmatprep.mubr.f32.mxu1 %v2255_v26  ;;  %304 = vmatprep.subr.mxu1 %v2268_v30  ;;  %v699_v30 = vsub.f32 %v110_v62, %v2359_v18 }
  0x3f   :  { %1239 = vmatprep.mubr.f32.mxu0 %v2257_v27  ;;  %1248 = vmatprep.subr.mxu0 %v2272_v32 }
  0x44   :  { %297 = vmatmul.mubr.f32.vlgmr.msra.gmra.mrb[0].mxu1 %v2241_v19  ;;  %1241 = vmatmul.mubr.f32.vlgmr.msra.gmra.mrb[0].mxu0 %v2243_v21 }
  0x45   :  { %307 = vmatpush1.xpose.msra.mxu1 %v2250_v24  ;;  %1251 = vmatpush1.xpose.msra.mxu0 %v2253_v25  ;;  %v694_v24 = vand.u32 4294901760, %v2345_v11  ;;  %v1638_v25 = vand.u32 4294901760, %v2353_v13 }
  0x46   :  { %372 = vmatprep.mubr.f32.mxu1 %v205_v34  ;;  %381 = vmatprep.subr.mxu1 %v2245_v22 }
  0x47   :  { %1316 = vmatprep.mubr.f32.mxu0 %v1149_v35  ;;  %1325 = vmatprep.subr.mxu0 %v2247_v23  ;;  %v700_v35 = vand.u32 4294901760, %v699_v30 }
  0x4c   :  { %375 = vmatmul.mubr.f32.vlgmr.msra.gmra.mrb[0].mxu1 %v2260_v28  ;;  %1319 = vmatmul.mubr.f32.vlgmr.msra.gmra.mrb[0].mxu0 %v2263_v29  ;;  %v683_v28 = vsub.f32 %v66_v63, %v2355_v14  ;;  %v1627_v29 = vsub.f32 %v83_v1, %v2357_v16 }
  0x4d   :  { %383 = vmatpush1.xpose.msra.mxu1 %v2237_v15  ;;  %1327 = vmatpush1.xpose.msra.mxu0 %v2239_v17 }
  0x4e   :  { %449 = vmatprep.mubr.f32.mxu1 %v206_v42  ;;  %461 = vmatprep.subr.mxu1 %v222_v38  ;;  %v1628_v34 = vand.u32 4294901760, %v1627_v29  ;;  %v701_v42 = vsub.f32 %v699_v30, %v700_v35 }
  0x4f   :  { %1393 = vmatprep.mubr.f32.mxu0 %v1150_v43  ;;  %1405 = vmatprep.subr.mxu0 %v1166_v40 }
  0x50   :  { %v1629_v41 = vsub.f32 %v1627_v29, %v1628_v34  ;;  %v702_v46 = vand.u32 4294901760, %v701_v42 }
  0x52   :  { %v1630_v45 = vand.u32 4294901760, %v1629_v41 }
  0x54   :  { %453 = vmatmul.mubr.f32.vlgmr.msra.gmra.mrb[0].mxu1 %v212_v36  ;;  %1397 = vmatmul.mubr.f32.vlgmr.msra.gmra.mrb[0].mxu0 %v1156_v37 }
  0x55   :  { %465 = vmatpush1.xpose.msra.mxu1 %v228_v31  ;;  %1409 = vmatpush1.xpose.msra.mxu0 %v1172_v33  ;;  %v1643_v31 = vsub.f32 %v127_v0, %v2361_v20  ;;  %v695_v33 = vsub.f32 %v2345_v11, %v694_v24 }
  0x56   :  { %529 = vmatprep.mubr.f32.mxu1 %v2255_v26  ;;  %537 = vmatprep.subr.mxu1 %v2245_v22  ;;  %v678_v22 = vand.u32 4294901760, %v2342_v10 }
  0x57   :  { %1473 = vmatprep.mubr.f32.mxu0 %v2257_v27  ;;  %1481 = vmatprep.subr.mxu0 %v2247_v23  ;;  %v1622_v23 = vand.u32 4294901760, %v2350_v12  ;;  %v1644_v36 = vand.u32 4294901760, %v1643_v31  ;;  %v696_v38 = vand.u32 4294901760, %v695_v33 }
  0x58   :  { %v679_v32 = vsub.f32 %v2342_v10, %v678_v22 }
  0x59   :  { %v1645_v43 = vsub.f32 %v1643_v31, %v1644_v36 }
  0x5a   :  { %v680_v37 = vand.u32 4294901760, %v679_v32 }
  0x5b   :  { %v1646_v47 = vand.u32 4294901760, %v1645_v43 }
  0x5c   :  { %531 = vmatmul.mubr.f32.vlgmr.msra.gmra.mrb[0].mxu1 %v2241_v19  ;;  %1475 = vmatmul.mubr.f32.vlgmr.msra.gmra.mrb[0].mxu0 %v2243_v21 }
  0x5d   :  { %539 = vmatpush1.xpose.msra.mxu1 %v2237_v15  ;;  %1483 = vmatpush1.xpose.msra.mxu0 %v2239_v17  ;;  %v1623_v15 = vsub.f32 %v2350_v12, %v1622_v23  ;;  %v1639_v17 = vsub.f32 %v2353_v13, %v1638_v25 }
  0x5e   :  { %603 = vmatprep.mubr.f32.mxu1 %v2255_v26  ;;  %611 = vmatprep.subr.mxu1 %v2323_v7  ;;  %v684_v26 = vand.u32 4294901760, %v683_v28 }
  0x5f   :  { %1547 = vmatprep.mubr.f32.mxu0 %v2257_v27  ;;  %1555 = vmatprep.subr.mxu0 %v2327_v5  ;;  %v1624_v39 = vand.u32 4294901760, %v1623_v15  ;;  %v1640_v40 = vand.u32 4294901760, %v1639_v17 }
  0x60   :  { %v685_v27 = vsub.f32 %v683_v28, %v684_v26 }
  0x62   :  { %v686_v44 = vand.u32 4294901760, %v685_v27 }
  0x64   :  { %605 = vmatmul.mubr.f32.vlgmr.msra.gmra.mrb[0].mxu1 %v2241_v19  ;;  %1549 = vmatmul.mubr.f32.vlgmr.msra.gmra.mrb[0].mxu0 %v2243_v21  ;;  %v2044_v19 = vld [vmem:[%s2444_s2] ss:$0 sm:$0xff] }
  0x65   :  { %613 = vmatpush1.xpose.msra.mxu1 %v2359_v18  ;;  %1557 = vmatpush1.xpose.msra.mxu0 %v2361_v20 }
  0x66   :  { %681 = vmatprep.mubr.f32.mxu1 %v680_v37  ;;  %697 = vmatprep.subr.mxu1 %v696_v38 }
  0x67   :  { %1625 = vmatprep.mubr.f32.mxu0 %v1624_v39  ;;  %1641 = vmatprep.subr.mxu0 %v1640_v40 }
  0x6c   :  { %687 = vmatmul.mubr.f32.vlgmr.msra.gmra.mrb[0].mxu1 %v686_v44  ;;  %1631 = vmatmul.mubr.f32.vlgmr.msra.gmra.mrb[0].mxu0 %v1630_v45 }
  0x6d   :  { %703 = vmatpush1.xpose.msra.mxu1 %v702_v46  ;;  %1647 = vmatpush1.xpose.msra.mxu0 %v1646_v47 }
  0x6e   :  { %767 = vmatprep.mubr.f32.mxu1 %v2325_v8  ;;  %776 = vmatprep.subr.mxu1 %v2345_v11 }
  0x6f   :  { %1711 = vmatprep.mubr.f32.mxu0 %v2329_v9  ;;  %1720 = vmatprep.subr.mxu0 %v2353_v13 }
  0x74   :  { %769 = vmatmul.mubr.f32.vlgmr.msra.gmra.mrb[0].mxu1 %v2355_v14  ;;  %1713 = vmatmul.mubr.f32.vlgmr.msra.gmra.mrb[0].mxu0 %v2357_v16 }
  0x75   :  { %779 = vmatpush1.xpose.msra.mxu1 %v699_v30  ;;  %1723 = vmatpush1.xpose.msra.mxu0 %v1643_v31 }
  0x76   :  { %844 = vmatprep.mubr.f32.mxu1 %v2342_v10  ;;  %853 = vmatprep.subr.mxu1 %v2323_v7 }
  0x77   :  { %1788 = vmatprep.mubr.f32.mxu0 %v2350_v12  ;;  %1797 = vmatprep.subr.mxu0 %v2327_v5 }
  0x7c   :  { %847 = vmatmul.mubr.f32.vlgmr.msra.gmra.mrb[0].mxu1 %v683_v28  ;;  %1791 = vmatmul.mubr.f32.vlgmr.msra.gmra.mrb[0].mxu0 %v1627_v29 }
  0x7d   :  { %855 = vmatpush1.xpose.msra.mxu1 %v2359_v18  ;;  %1799 = vmatpush1.xpose.msra.mxu0 %v2361_v20 }
  0x7e   :  { %921 = vmatprep.mubr.f32.mxu1 %v678_v22  ;;  %933 = vmatprep.subr.mxu1 %v694_v24 }
  0x7f   :  { %1865 = vmatprep.mubr.f32.mxu0 %v1622_v23  ;;  %1877 = vmatprep.subr.mxu0 %v1638_v25 }
  0x84   :  { %925 = vmatmul.mubr.f32.vlgmr.msra.gmra.mrb[0].mxu1 %v684_v26  ;;  %1869 = vmatmul.mubr.f32.vlgmr.msra.gmra.mrb[0].mxu0 %v1628_v34 }
  0x85   :  { %937 = vmatpush1.xpose.msra.mxu1 %v700_v35  ;;  %1881 = vmatpush1.xpose.msra.mxu0 %v1644_v36 }
  0x86   :  { %1001 = vmatprep.mubr.f32.mxu1 %v2325_v8  ;;  %1009 = vmatprep.subr.mxu1 %v2323_v7 }
  0x87   :  { %1945 = vmatprep.mubr.f32.mxu0 %v2329_v9  ;;  %1953 = vmatprep.subr.mxu0 %v2327_v5 }
  0x8c   :  { %1003 = vmatmul.mubr.f32.vlgmr.msra.gmra.mrb[0].mxu1 %v2355_v14  ;;  %1947 = vmatmul.mubr.f32.vlgmr.msra.gmra.mrb[0].mxu0 %v2357_v16 }
  0x8d   :  { %1011 = vmatpush1.xpose.msra.mxu1 %v2359_v18  ;;  %1955 = vmatpush1.xpose.msra.mxu0 %v2361_v20 }
  0x8e   :  { %1075 = vmatprep.mubr.f32.mxu1 %v2325_v8  ;;  %2019 = vmatprep.mubr.f32.mxu0 %v2329_v9 }
  0x94   :  { %1077 = vmatmul.mubr.f32.vlgmr.msra.gmra.mrb[0].mxu1 %v2355_v14  ;;  %2021 = vmatmul.mubr.f32.vlgmr.msra.gmra.mrb[0].mxu0 %v2357_v16 }
 0x167   :  { %v1078_v21 = vpop.f32.mrb[0].mxu1  ;;  %v2022_v48 = vpop.f32.mrb[0].mxu0 }
 0x168   :  { %v2045_v49 = vadd.f32 %v2044_v19, %v1078_v21  ;;  %v1080_v50 = vpop.f32.mrb[1].mxu1  ;;  %v2024_v51 = vpop.f32.mrb[1].mxu0 }
 0x16a   :  { %v2046_v52 = vadd.f32 %v2045_v49, %v2022_v48 }
 0x16c   :  { %2027 = vst.msk [vmem:[#allocation7] sm:$0x3] %vm2026_vm0, %v2046_v52 }
 0x16d   :  { %2154 = shalt.err (!%p2151_p6)
}
 0x16e   :  { %s2155_s13 = scalar_lea.hbm %s2445_s3, 32 }
 0x16f   :  { %p2156_p7 = scmp.ne.s32.totalorder %s2445_s3, %s2155_s13  ;;  %p2159_p8 = scmp.lt.u32.totalorder %s2155_s13, %s2445_s3 }
 0x171   :  { %p2161_p9 = pnand %p2159_p8, %p2156_p7 }
 0x173   :  { %2164 = shalt.err (!%p2161_p9)
}
 0x174   :  { %2037 = dma.vmem_to_hbm [thread:$0]  %s2035_s10, 32, %s2445_s3, [#allocation4]  }
 0x175   :  { %2169 = dma.done.wait [#allocation4], 32  }
 0x176   :  { %2170 = vsyncadd [#allocation4], 4294967264 }
 0x177   :  { %2041 = vsyncpa [#allocation3], 1 }
 0x178   :  { %2042 = vsyncpa [#allocation6], 1 }
 0x179   :  { %2043 = vsyncpa [#allocation4], 1 }

</bundles_post_ra>
